<compile_context>
chip_gen: v7x
topology: tpu7x:2x2x1
jax: 0.10.0
libtpu: 0.0.40
codegen_flags: <defaults>
</compile_context>

<pallas_src>
import math

import jax
import jax.numpy as jnp
from jax.experimental import pallas as pl
from jax.experimental.pallas import tpu as pltpu

d_Q = 64
NEG_INF = -1.0e9               # matches torch masked_fill_ value (-1000000000.0)
SCALE = 1.0 / math.sqrt(d_Q)


def _sdpa_kernel(q_ref, k_ref, v_ref, mask_ref, o_ref):
    # One (batch*head) slice per grid step (leading axis squeezed by BlockSpec).
    #   q_ref: (Lq, Dk)  k_ref: (Lk, Dk)  v_ref: (Lk, Dv)
    #   mask_ref: (Lq, Lk) int32 (nonzero == masked)
    q = q_ref[...]
    k = k_ref[...]
    v = v_ref[...]
    mask = mask_ref[...] != 0

    # score = Q @ K^T / sqrt(d_Q)   (MXU, f32 accumulation; contraction on Dk)
    score = jax.lax.dot_general(
        q, k, (((1,), (1,)), ((), ())),
        preferred_element_type=jnp.float32) * SCALE
    score = jnp.where(mask, NEG_INF, score)

    # Numerically-stable softmax over the key axis.
    m = jnp.max(score, axis=-1, keepdims=True)
    e = jnp.exp(score - m)
    s = jnp.sum(e, axis=-1, keepdims=True)
    attn = e / s
    # masked_fill_(attn_mask, 0) after the softmax, exactly as in the module.
    attn = jnp.where(mask, 0.0, attn)

    # context = attn @ V   (MXU, f32 accumulation)
    ctx = jnp.dot(attn.astype(v.dtype), v, preferred_element_type=jnp.float32)
    o_ref[...] = ctx.astype(o_ref.dtype)


def scaled_dot_product_attention(Q, K, V, attn_mask):
    """Q: (B,H,Lq,Dk)  K: (B,H,Lk,Dk)  V: (B,H,Lk,Dv)  attn_mask: (B,H,Lq,Lk) bool."""
    B, H, Lq, Dk = Q.shape
    Lk = K.shape[2]
    Dv = V.shape[3]
    BH = B * H

    q2 = Q.reshape(BH, Lq, Dk)
    k2 = K.reshape(BH, Lk, Dk)
    v2 = V.reshape(BH, Lk, Dv)
    m2 = attn_mask.reshape(BH, Lq, Lk).astype(jnp.int32)

    out2 = pl.pallas_call(
        _sdpa_kernel,
        out_shape=jax.ShapeDtypeStruct((BH, Lq, Dv), Q.dtype),
        grid_spec=pltpu.PrefetchScalarGridSpec(
            num_scalar_prefetch=0,
            grid=(BH,),
            in_specs=[
                pl.BlockSpec((None, Lq, Dk), lambda i: (i, 0, 0)),  # Q (one head)
                pl.BlockSpec((None, Lk, Dk), lambda i: (i, 0, 0)),  # K (one head)
                pl.BlockSpec((None, Lk, Dv), lambda i: (i, 0, 0)),  # V (one head)
                pl.BlockSpec((None, Lq, Lk), lambda i: (i, 0, 0)),  # mask (one head)
            ],
            out_specs=pl.BlockSpec((None, Lq, Dv), lambda i: (i, 0, 0)),
        ),
        compiler_params=pltpu.CompilerParams(
            dimension_semantics=("parallel",),   # shard heads across TCs on v7x
            vmem_limit_bytes=64 << 20,
        ),
    )(q2, k2, v2, m2)
    return out2.reshape(B, H, Lq, Dv)


def _reference(Q, K, V, attn_mask):
    score = jnp.einsum('bhqd,bhkd->bhqk', Q, K) * SCALE
    score = jnp.where(attn_mask, NEG_INF, score)
    attn = jax.nn.softmax(score, axis=-1)
    attn = jnp.where(attn_mask, 0.0, attn)
    return jnp.einsum('bhqk,bhkd->bhqd', attn, V)


if __name__ == "__main__":
    key = jax.random.PRNGKey(0)
    k_q, k_k, k_v, k_m = jax.random.split(key, 4)

    batch, n_heads, len_q, len_k, d_k, d_v = 2, 2, 8, 8, d_Q, 64

    Q = jax.random.normal(k_q, (batch, n_heads, len_q, d_k), dtype=jnp.float32)
    K = jax.random.normal(k_k, (batch, n_heads, len_k, d_k), dtype=jnp.float32)
    V = jax.random.normal(k_v, (batch, n_heads, len_k, d_v), dtype=jnp.float32)
    # Deterministic boolean mask (True == masked out), like a padding mask.
    attn_mask = jax.random.bernoulli(k_m, 0.25, (batch, n_heads, len_q, len_k))

    out = scaled_dot_product_attention(Q, K, V, attn_mask)
    out = jax.block_until_ready(out)

    ref = _reference(Q, K, V, attn_mask)
    assert out.shape == (batch, n_heads, len_q, d_v)
    assert jnp.allclose(out, ref, atol=1e-4, rtol=1e-4), "mismatch vs reference"

    print("KERNEL_OK")
</pallas_src>

<mosaic_0001>
module attributes {stable_mosaic.version = 11 : i64} {
  func.func @_sdpa_kernel(%arg0: i32, %arg1: memref<1x8x64xf32, #tpu.memory_space<vmem>>, %arg2: memref<1x8x64xf32, #tpu.memory_space<vmem>>, %arg3: memref<1x8x64xf32, #tpu.memory_space<vmem>>, %arg4: memref<1x8x8xi32, #tpu.memory_space<vmem>>, %arg5: memref<1x8x64xf32, #tpu.memory_space<vmem>>) attributes {dimension_semantics = [#tpu.dimension_semantics<parallel>], iteration_bounds = array<i64: 4>, scalar_prefetch = 0 : i64, scratch_operands = 0 : i64, tpu.core_type = #tpu.core_type<tc>, window_params = [{transform_indices = @transform_0, window_bounds = array<i64: 1, 8, 64>}, {transform_indices = @transform_1, window_bounds = array<i64: 1, 8, 64>}, {transform_indices = @transform_2, window_bounds = array<i64: 1, 8, 64>}, {transform_indices = @transform_3, window_bounds = array<i64: 1, 8, 8>}, {transform_indices = @transform_4, window_bounds = array<i64: 1, 8, 64>}]} {
    %c0 = arith.constant 0 : index
    %c0_0 = arith.constant 0 : index
    %c0_1 = arith.constant 0 : index
    %0 = vector.load %arg1[%c0, %c0_0, %c0_1] : memref<1x8x64xf32, #tpu.memory_space<vmem>>, vector<1x8x64xf32>
    %1 = vector.shape_cast %0 : vector<1x8x64xf32> to vector<8x64xf32>
    %c0_2 = arith.constant 0 : index
    %c0_3 = arith.constant 0 : index
    %c0_4 = arith.constant 0 : index
    %2 = vector.load %arg2[%c0_2, %c0_3, %c0_4] : memref<1x8x64xf32, #tpu.memory_space<vmem>>, vector<1x8x64xf32>
    %3 = vector.shape_cast %2 : vector<1x8x64xf32> to vector<8x64xf32>
    %c0_5 = arith.constant 0 : index
    %c0_6 = arith.constant 0 : index
    %c0_7 = arith.constant 0 : index
    %4 = vector.load %arg3[%c0_5, %c0_6, %c0_7] : memref<1x8x64xf32, #tpu.memory_space<vmem>>, vector<1x8x64xf32>
    %5 = vector.shape_cast %4 : vector<1x8x64xf32> to vector<8x64xf32>
    %c0_8 = arith.constant 0 : index
    %c0_9 = arith.constant 0 : index
    %c0_10 = arith.constant 0 : index
    %6 = vector.load %arg4[%c0_8, %c0_9, %c0_10] : memref<1x8x8xi32, #tpu.memory_space<vmem>>, vector<1x8x8xi32>
    %7 = vector.shape_cast %6 : vector<1x8x8xi32> to vector<8x8xi32>
    %c0_i32 = arith.constant 0 : i32
    %8 = vector.broadcast %c0_i32 : i32 to vector<8x8xi32>
    %9 = arith.cmpi ne, %7, %8 : vector<8x8xi32>
    %cst = arith.constant dense<0.000000e+00> : vector<8x8xf32>
    %10 = tpu.matmul %1, %3, %cst {dimension_numbers = #tpu.dot_dimension_numbers<[1], [1], [0], [0], [0, 0, 1, 0], [], []>} : vector<8x64xf32>, vector<8x64xf32>, vector<8x8xf32> -> vector<8x8xf32>
    %cst_11 = arith.constant 1.250000e-01 : f32
    %11 = vector.broadcast %cst_11 : f32 to vector<8x8xf32>
    %12 = arith.mulf %10, %11 : vector<8x8xf32>
    %cst_12 = arith.constant -1.000000e+09 : f32
    %13 = vector.broadcast %cst_12 : f32 to vector<8x8xf32>
    %14 = arith.select %9, %13, %12 : vector<8x8xi1>, vector<8x8xf32>
    %cst_13 = arith.constant dense<0xFF800000> : vector<8xf32>
    %15 = vector.multi_reduction <maximumf>, %14, %cst_13 [1] : vector<8x8xf32> to vector<8xf32>
    %16 = vector.shape_cast %15 : vector<8xf32> to vector<8x1xf32>
    %17 = vector.broadcast %16 : vector<8x1xf32> to vector<8x8xf32>
    %18 = arith.subf %14, %17 : vector<8x8xf32>
    %19 = math.exp %18 : vector<8x8xf32>
    %cst_14 = arith.constant dense<0.000000e+00> : vector<8xf32>
    %20 = vector.multi_reduction <add>, %19, %cst_14 [1] : vector<8x8xf32> to vector<8xf32>
    %21 = vector.shape_cast %20 : vector<8xf32> to vector<8x1xf32>
    %22 = vector.broadcast %21 : vector<8x1xf32> to vector<8x8xf32>
    %23 = arith.divf %19, %22 : vector<8x8xf32>
    %cst_15 = arith.constant 0.000000e+00 : f32
    %24 = vector.broadcast %cst_15 : f32 to vector<8x8xf32>
    %25 = arith.select %9, %24, %23 : vector<8x8xi1>, vector<8x8xf32>
    %cst_16 = arith.constant dense<0.000000e+00> : vector<8x64xf32>
    %26 = tpu.matmul %25, %5, %cst_16 {dimension_numbers = #tpu.dot_dimension_numbers<[1], [0], [0], [1], [0, 0, 1, 1], [], []>} : vector<8x8xf32>, vector<8x64xf32>, vector<8x64xf32> -> vector<8x64xf32>
    %c0_17 = arith.constant 0 : index
    %c0_18 = arith.constant 0 : index
    %c0_19 = arith.constant 0 : index
    %27 = vector.load %arg5[%c0_17, %c0_18, %c0_19] : memref<1x8x64xf32, #tpu.memory_space<vmem>>, vector<1x8x64xf32>
    %28 = vector.shape_cast %27 : vector<1x8x64xf32> to vector<8x64xf32>
    %29 = vector.shape_cast %26 : vector<8x64xf32> to vector<1x8x64xf32>
    tpu.vector_store %arg5[%c0_17, %c0_18, %c0_19], %29 {strides = array<i32>} : memref<1x8x64xf32, #tpu.memory_space<vmem>>, vector<1x8x64xf32>,
    return
  }
  func.func @transform_0(%arg0: i32) -> (i32, i32, i32) {
    %c0_i32 = arith.constant 0 : i32
    %c0_i32_0 = arith.constant 0 : i32
    %c0_i32_1 = arith.constant 0 : i32
    return %arg0, %c0_i32, %c0_i32_0 : i32, i32, i32
  }
  func.func @transform_1(%arg0: i32) -> (i32, i32, i32) {
    %c0_i32 = arith.constant 0 : i32
    %c0_i32_0 = arith.constant 0 : i32
    %c0_i32_1 = arith.constant 0 : i32
    return %arg0, %c0_i32, %c0_i32_0 : i32, i32, i32
  }
  func.func @transform_2(%arg0: i32) -> (i32, i32, i32) {
    %c0_i32 = arith.constant 0 : i32
    %c0_i32_0 = arith.constant 0 : i32
    %c0_i32_1 = arith.constant 0 : i32
    return %arg0, %c0_i32, %c0_i32_0 : i32, i32, i32
  }
  func.func @transform_3(%arg0: i32) -> (i32, i32, i32) {
    %c0_i32 = arith.constant 0 : i32
    %c0_i32_0 = arith.constant 0 : i32
    %c0_i32_1 = arith.constant 0 : i32
    return %arg0, %c0_i32, %c0_i32_0 : i32, i32, i32
  }
  func.func @transform_4(%arg0: i32) -> (i32, i32, i32) {
    %c0_i32 = arith.constant 0 : i32
    %c0_i32_0 = arith.constant 0 : i32
    %c0_i32_1 = arith.constant 0 : i32
    return %arg0, %c0_i32, %c0_i32_0 : i32, i32, i32
  }
}

</mosaic_0001>

<bundles_post_ra>
// kernel: tpu_custom_call.1
= control target key start
LH: loop header
LB: loop body
LE: loop exit
PB: predicated region body
PF: predicated region fallthrough
CT: control target
= control target key end

     0   :  { %s1249_s0 = inlined_call_operand.hbm [shape: f32[4,8,64], index: 0, kind: input, shape index: {}]   ;;  %s1250_s1 = inlined_call_operand.hbm [shape: f32[4,8,64], index: 1, kind: input, shape index: {}]   ;;  %s1251_s2 = inlined_call_operand.hbm [shape: f32[4,8,64], index: 2, kind: input, shape index: {}]   ;;  %s1252_s3 = inlined_call_operand.hbm [shape: s32[4,8,8], index: 3, kind: input, shape index: {}]   ;;  %s1253_s4 = inlined_call_operand.hbm [shape: f32[4,8,64], index: 4, kind: output, shape index: {}]  }
   0x1   :  { %1259 = sst [smem:[#allocation17_spill]] %s1250_s1 }
   0x2   :  { %9 = vsyncpa [#allocation3], 0 }
   0x3   :  { %11 = vsyncpa [#allocation3 + $0x1], 0 }
   0x4   :  { %12 = vsyncpa [#allocation6], 0 }
   0x5   :  { %14 = vsyncpa [#allocation6 + $0x1], 0 }
   0x6   :  { %15 = vsyncpa [#allocation9], 0 }
   0x7   :  { %17 = vsyncpa [#allocation9 + $0x1], 0 }
   0x8   :  { %18 = vsyncpa [#allocation4], 0 }
   0x9   :  { %20 = vsyncpa [#allocation4 + $0x1], 0  ;;  %s975_s15 = smov 0   ;;  %s977_s16 = smov 0  }
   0xa   :  { %s979_s17 = smov 0   ;;  %s981_s18 = smov 0  }
   0xb LB: > { %1260 = sst [smem:[#allocation15_spill]] %s937_s17  ;;  %s996_s19 = sadd.s32 4294967295, %s941_s18   ;;  %s941_s18 = sphi %s981_s18, %s1281_s18   ;;  %s937_s17 = sphi %s979_s17, %s1278_s17   ;;  %s933_s16 = sphi %s977_s16, %s1280_s16   ;;  %s929_s15 = sphi %s975_s15, %s1279_s15  }
   0xc   : > { %s642_s20 = sadd.s32 4294967294, %s941_s18   ;;  %s1000_s21 = sadd.s32 1, %s941_s18  }
   0xd   : > { %s33_s22 = sadd.s32 1, %s937_s17  ;;  %s30_s23 = ssub.s32 %s941_s18, %s1000_s21 }
   0xe   : > { %p40_p0 = scmp.ne.s32.totalorder %s937_s17, %s933_s16  ;;  %p31_p1 = scmp.eq.s32.totalorder %s30_s23, 0 }
   0xf   : > { %p41_p2 = scmp.eq.s32.totalorder %s941_s18, 0  ;;  %p46_p3 = scmp.ne.s32.totalorder %s933_s16, %s929_s15 }
  0x10   : > { %p47_p4 = scmp.eq.s32.totalorder %s996_s19, 0  ;;  %p148_p7 = scmp.eq.s32.totalorder %s996_s19, 3 }
  0x11   : > { %s1012_s24 = scalar_select %p31_p1, %s937_s17, %s33_s22  }
  0x12   : > { %p42_p5 = por %p41_p2, %p40_p0  ;;  %p1014_p6 = por %p47_p4, %p46_p3 }
  0x13   : > { %1261 = sst [smem:[#allocation16_spill]] %s1012_s24  ;;  %p154_p8 = scmp.eq.s32.totalorder %s642_s20, 3 }
  0x14   : > { %s1262_s25 = scalar_select %p1014_p6, 1, 0 }
  0x15   : > { %p707_p9 = scmp.lt.s32.totalorder %s941_s18, 4  ;;  %p1020_p10 = por %p148_p7, %p40_p0 }
  0x16   : > { %p1024_p11 = por %p154_p8, %p46_p3  ;;  %s1029_s28 = sand.u32 1, %s937_s17  }
  0x17   : > { %s1263_s26 = scalar_select %p1020_p10, 1, 0 }
  0x18   : > { %s1264_s27 = scalar_select %p1024_p11, 1, 0 }
  0x19   : > { %s1032_s29 = sshll.u32 %s941_s18, 7  ;;  %s1035_s30 = sshll.u32 %s1029_s28, 3 }
  0x1a   : > { %p1037_p12 = pnand %p707_p9, %p42_p5  ;;  %s192_s6 = sand.u32 1, %s941_s18  }
  0x1b   : > { %s1266_s1 = sld [smem:[#allocation17_spill]]  ;;  %s196_s10 = scalar_lea.vmem [#allocation5], %s1035_s30 }
  0x1c   : > { %s1265_s5 = scalar_select %p1037_p12, 1, 0 }
  0x1d   : > { %s203_s11 = sshll.u32 %s196_s10, 4  ;;  %s1052_s12 = scalar_lea.sflag [#allocation6], %s192_s6  ;;  %s1049_s11 = int_to_ptr.vmem [resolvable:$true] %s203_s11 }
  0x1e   : > { %p1058_p1 = pneg %p1037_p12 }
  0x21   : > { %s1046_s9 = scalar_lea.hbm %s1266_s1, %s1032_s29  ;;  %s752_s23 = scalar_lea.hbm %s1266_s1, 512 }
  0x22   : > { %s747_s13 = scalar_lea.hbm %s1046_s9, 128  ;;  %p753_p4 = scmp.lt.u32.totalorder %s1046_s9, %s1266_s1 }
  0x23   : > { %p748_p0 = scmp.ne.s32.totalorder %s1046_s9, %s747_s13  ;;  %p754_p5 = scmp.lt.u32.totalorder %s752_s23, %s747_s13 }
  0x24   : > { %p756_p8 = scmp.lt.u32.totalorder %s747_s13, %s1046_s9 }
  0x25   : > { %p750_p2 = pnand %p1058_p1, %p748_p0  ;;  %p755_p7 = por %p754_p5, %p753_p4 }
  0x27   : > { %p751_p3 = pneg %p750_p2  ;;  %p757_p9 = por %p756_p8, %p755_p7 }
  0x29   : > { %p758_p13 = pnand %p757_p9, %p751_p3 }
  0x2b   : > { %761 = shalt.err (!%p758_p13)
}
  0x2c   : > { %s762_s6 = scalar_lea.vmem %s1049_s11, 128  ;;  %s943_s10 = smov [#allocation5]  }
  0x2d   : > { %p763_p0 = scmp.ne.s32.totalorder %s1049_s11, %s762_s6  ;;  %s767_s20 = sshll.u32 %s943_s10, 4  ;;  %s768_s20 = int_to_ptr.vmem [resolvable:$false] %s767_s20 }
  0x2e   : > { %s769_s22 = scalar_lea.vmem %s768_s20, 256  ;;  %p770_p10 = scmp.lt.s32.totalorder %s1049_s11, %s768_s20 }
  0x2f   : > { %p765_p2 = pnand %p763_p0, %p1058_p1  ;;  %p771_p6 = scmp.lt.s32.totalorder %s769_s22, %s762_s6 }
  0x31   : > { %p766_p11 = pneg %p765_p2  ;;  %p772_p4 = por %p771_p6, %p770_p10 }
  0x33   : > { %p773_p5 = pnand %p772_p4, %p766_p11 }
  0x35   : > { %776 = shalt.err (!%p773_p5)
}
  0x36   : > { %696 = dma.hbm_to_vmem [thread:$0]  (!%p1037_p12), %s1046_s9, 128, %s1049_s11, %s1052_s12  }
  0x37   : > { %p244_p13 = scmp.lt.s32.totalorder %s941_s18, 5  ;;  %s1087_s7 = scalar_lea.hbm %s1249_s0, %s1032_s29 }
  0x38   : > { %p1268_p6 = scmp.ge.s32.totalorder %s941_s18, 1  ;;  %s178_s6 = scalar_lea.vmem [#allocation2], %s1035_s30 }
  0x39   : > { %s185_s10 = sshll.u32 %s178_s6, 4  ;;  %s175_s20 = scalar_lea.sflag [#allocation3], %s1029_s28  ;;  %s186_s10 = int_to_ptr.vmem [resolvable:$true] %s185_s10 }
  0x3a   : > { %p1091_p10 = pnand %p1268_p6, %p244_p13  ;;  %s777_s9 = scalar_lea.hbm %s1087_s7, 128 }
  0x3b   : > { %p778_p11 = scmp.ne.s32.totalorder %s1087_s7, %s777_s9  ;;  %s782_s13 = scalar_lea.hbm %s1249_s0, 512 }
  0x3c   : > { %s1269_s8 = scalar_select %p1091_p10, 1, 0 }
  0x3d   : > { %p780_p3 = pnand %p778_p11, %p1058_p1  ;;  %p783_p8 = scmp.lt.u32.totalorder %s1087_s7, %s1249_s0 }
  0x3e   : > { %p784_p9 = scmp.lt.u32.totalorder %s782_s13, %s777_s9  ;;  %p786_p2 = scmp.lt.u32.totalorder %s777_s9, %s1087_s7 }
  0x3f   : > { %p781_p7 = pneg %p780_p3 }
  0x40   : > { %p785_p0 = por %p784_p9, %p783_p8 }
  0x42   : > { %p787_p4 = por %p786_p2, %p785_p0 }
  0x44   : > { %p788_p5 = pnand %p787_p4, %p781_p7 }
  0x46   : > { %791 = shalt.err (!%p788_p5)
}
  0x47   : > { %s792_s6 = scalar_lea.vmem %s186_s10, 128  ;;  %s944_s24 = smov [#allocation2]  }
  0x48   : > { %p793_p13 = scmp.ne.s32.totalorder %s186_s10, %s792_s6  ;;  %s797_s17 = sshll.u32 %s944_s24, 4  ;;  %s798_s17 = int_to_ptr.vmem [resolvable:$false] %s797_s17 }
  0x49   : > { %s799_s11 = scalar_lea.vmem %s798_s17, 256  ;;  %p800_p3 = scmp.lt.s32.totalorder %s186_s10, %s798_s17 }
  0x4a   : > { %p795_p6 = pnand %p793_p13, %p1058_p1  ;;  %p801_p10 = scmp.lt.s32.totalorder %s799_s11, %s792_s6 }
  0x4c   : > { %p796_p11 = pneg %p795_p6  ;;  %p802_p12 = por %p801_p10, %p800_p3 }
  0x4e   : > { %p803_p8 = pnand %p802_p12, %p796_p11 }
  0x50   : > { %806 = shalt.err (!%p803_p8)
}
  0x51   : > { %p1270_p9 = scmp.ne.s32.totalorder %s1265_s5, 0  ;;  %s1118_s22 = scalar_lea.hbm %s1251_s2, %s1032_s29 }
  0x52   : > { %s214_s17 = scalar_lea.vmem [#allocation7], %s1035_s30  ;;  %s807_s13 = scalar_lea.hbm %s1118_s22, 128 }
  0x53   : > { %693 = dma.hbm_to_vmem [thread:$0]  (!%p1270_p9), %s1087_s7, 128, %s186_s10, %s175_s20  }
  0x54   : > { %s221_s24 = sshll.u32 %s214_s17, 4  ;;  %p808_p12 = scmp.ne.s32.totalorder %s1118_s22, %s807_s13  ;;  %s222_s24 = int_to_ptr.vmem [resolvable:$true] %s221_s24 }
  0x55   : > { %s812_s7 = scalar_lea.hbm %s1251_s2, 512  ;;  %p813_p0 = scmp.lt.u32.totalorder %s1118_s22, %s1251_s2 }
  0x56   : > { %p810_p10 = pnand %p808_p12, %p1058_p1  ;;  %p814_p2 = scmp.lt.u32.totalorder %s812_s7, %s807_s13 }
  0x57   : > { %p816_p5 = scmp.lt.u32.totalorder %s807_s13, %s1118_s22 }
  0x58   : > { %p811_p7 = pneg %p810_p10  ;;  %p815_p4 = por %p814_p2, %p813_p0 }
  0x5a   : > { %p817_p13 = por %p816_p5, %p815_p4 }
  0x5c   : > { %p818_p6 = pnand %p817_p13, %p811_p7 }
  0x5e   : > { %821 = shalt.err (!%p818_p6)
}
  0x5f   : > { %s822_s11 = scalar_lea.vmem %s222_s24, 128  ;;  %s945_s1 = smov [#allocation7]  }
  0x60   : > { %p823_p11 = scmp.ne.s32.totalorder %s222_s24, %s822_s11  ;;  %s827_s9 = sshll.u32 %s945_s1, 4  ;;  %s828_s9 = int_to_ptr.vmem [resolvable:$false] %s827_s9 }
  0x61   : > { %s829_s17 = scalar_lea.vmem %s828_s9, 256  ;;  %p830_p12 = scmp.lt.s32.totalorder %s222_s24, %s828_s9 }
  0x62   : > { %p825_p3 = pnand %p823_p11, %p1058_p1  ;;  %p831_p10 = scmp.lt.s32.totalorder %s829_s17, %s822_s11 }
  0x64   : > { %p826_p8 = pneg %p825_p3  ;;  %p832_p9 = por %p831_p10, %p830_p12 }
  0x66   : > { %p833_p0 = pnand %p832_p9, %p826_p8 }
  0x68   : > { %836 = shalt.err (!%p833_p0)
}
  0x69   : > { %p1271_p2 = scmp.ne.s32.totalorder %s1265_s5, 0  ;;  %s1143_s6 = scalar_lea.hbm %s1252_s3, %s1032_s29 }
  0x6a   : > { %s232_s7 = scalar_lea.vmem [#allocation8], %s1035_s30  ;;  %s229_s20 = scalar_lea.sflag [#allocation9], %s1029_s28 }
  0x6b   : > { %699 = dma.hbm_to_vmem [thread:$0]  (!%p1271_p2), %s1118_s22, 128, %s222_s24, %s1052_s12  }
  0x6c   : > { %s239_s10 = sshll.u32 %s232_s7, 4  ;;  %s837_s11 = scalar_lea.hbm %s1143_s6, 128  ;;  %s240_s10 = int_to_ptr.vmem [resolvable:$true] %s239_s10 }
  0x6d   : > { %p838_p9 = scmp.ne.s32.totalorder %s1143_s6, %s837_s11  ;;  %s842_s22 = scalar_lea.hbm %s1252_s3, 512 }
  0x6e   : > { %p843_p5 = scmp.lt.u32.totalorder %s1143_s6, %s1252_s3  ;;  %p844_p13 = scmp.lt.u32.totalorder %s842_s22, %s837_s11 }
  0x6f   : > { %p840_p7 = pnand %p838_p9, %p1058_p1  ;;  %p846_p11 = scmp.lt.u32.totalorder %s837_s11, %s1143_s6 }
  0x70   : > { %p845_p6 = por %p844_p13, %p843_p5 }
  0x71   : > { %p841_p4 = pneg %p840_p7 }
  0x72   : > { %p847_p3 = por %p846_p11, %p845_p6 }
  0x74   : > { %p848_p8 = pnand %p847_p3, %p841_p4 }
  0x76   : > { %851 = shalt.err (!%p848_p8)
}
  0x77   : > { %s852_s28 = scalar_lea.vmem %s240_s10, 128  ;;  %s946_s30 = smov [#allocation8]  }
  0x78   : > { %p853_p12 = scmp.ne.s32.totalorder %s240_s10, %s852_s28  ;;  %s857_s9 = sshll.u32 %s946_s30, 4  ;;  %s858_s9 = int_to_ptr.vmem [resolvable:$false] %s857_s9 }
  0x79   : > { %s859_s17 = scalar_lea.vmem %s858_s9, 256  ;;  %p860_p9 = scmp.lt.s32.totalorder %s240_s10, %s858_s9 }
  0x7a   : > { %p855_p10 = pnand %p853_p12, %p1058_p1  ;;  %p861_p7 = scmp.lt.s32.totalorder %s859_s17, %s852_s28 }
  0x7c   : > { %p856_p0 = pneg %p855_p10  ;;  %p862_p2 = por %p861_p7, %p860_p9 }
  0x7e   : > { %p863_p5 = pnand %p862_p2, %p856_p0 }
  0x80   : > { %866 = shalt.err (!%p863_p5)
}
  0x81   : > { %p1272_p13 = scmp.ne.s32.totalorder %s1265_s5, 0  ;;  %p1273_p4 = scmp.ne.s32.totalorder %s1269_s8, 0 }
  0x82   : > { %s1167_s14 = sand.u32 (!%p1273_p4), 1, %s933_s16   ;;  %p1274_p1 = scmp.ne.s32.totalorder (!%p1273_p4), %s1262_s25, 0 }
  0x83   : > { %702 = dma.hbm_to_vmem [thread:$0]  (!%p1272_p13), %s1143_s6, 128, %s240_s10, %s229_s20  }
  0x84   : > { %248 = sbr.rel (%p1273_p4) target bundleno = 908 (0x38c), region = 36  ;;  %s1170_s13 = sshll.u32 (!%p1273_p4), %s1167_s14, 3 }
  0x85   : > { %s251_s23 = scalar_lea.sflag (!%p1273_p4), [#allocation3], %s1167_s14  ;;  %s254_s7 = scalar_lea.vmem (!%p1273_p4), [#allocation2], %s1170_s13 }
  0x8b   : > { %912 = dma.done.wait (%p1274_p1), %s251_s23, 128  }
  0x8c   : > { %914 = vsyncadd (%p1274_p1), %s251_s23, 4294967168  ;;  %s259_s5 = sand.u32 1, %s996_s19   ;;  %s263_s6 = scalar_lea.vmem [#allocation5], %s1170_s13 }
  0x8d   : > { %s260_s8 = scalar_lea.sflag [#allocation6], %s259_s5 }
  0x8e   : > { %916 = dma.done.wait (%p1274_p1), %s260_s8, 256  }
  0x8f   : > { %918 = vsyncadd (%p1274_p1), %s260_s8, 4294967040  ;;  %s272_s10 = scalar_lea.vmem [#allocation7], %s1170_s13  ;;  %s278_s20 = scalar_lea.sflag [#allocation9], %s1167_s14 }
  0x90   : > { %s281_s11 = scalar_lea.vmem [#allocation8], %s1170_s13 }
  0x91   : > { %920 = dma.done.wait (%p1274_p1), %s278_s20, 128  }
  0x92   : > { %922 = vsyncadd (%p1274_p1), %s278_s20, 4294967168  ;;  %v947_v0 = vmov 0.0   ;;  %vm948_vm0 = vmmov 0   ;;  %vm326_vm1 = vcmask 523264   ;;  %v322_v1 = vld [vmem:[%s263_s6] sm:$0xff]  ;;  %v321_v2 = vld [vmem:[%s254_s7] sm:$0xff] }
  0x93   : > { %670 = vmatprep.subr.mxu0 %v947_v0  ;;  %672 = vmatprep.mubr.msk.f32.mxu0 %vm948_vm0, %v947_v0  ;;  %v324_v3 = vld [vmem:[%s281_s11] sm:$0xff]  ;;  %vm405_vm3 = vcmask 64512   ;;  %v323_v14 = vld [vmem:[%s272_s10] sm:$0xff]  ;;  %s663_s25 = sshll.u32 %s996_s19, 7  ;;  %s320_s1 = scalar_lea.vmem [#allocation10], %s1170_s13 }
  0x94   : > { %675 = vmatprep.subr.mxu1 %v947_v0  ;;  %677 = vmatprep.mubr.msk.f32.mxu1 %vm948_vm0, %v947_v0  ;;  %vm325_vm2 = vcmp.ne.s32.totalorder %v324_v3, 0  ;;  %s506_s12 = sshll.u32 %s320_s1, 4  ;;  %s1205_s29 = scalar_lea.hbm %s1253_s4, %s663_s25  ;;  %s1207_s12 = int_to_ptr.vmem [resolvable:$true] %s506_s12 }
  0x95   : > { %671 = vmatpush3.xpose.msk.msra.mxu0 %vm326_vm1, %v322_v1  ;;  %676 = vmatpush3.msra.mxu1 %v323_v14  ;;  %s493_s28 = scalar_lea.sflag [#allocation4], %s1167_s14  ;;  %s867_s30 = scalar_lea.vmem %s1207_s12, 128 }
  0x96   : > { %p868_p2 = scmp.ne.s32.totalorder %s1207_s12, %s867_s30  ;;  %p1275_p6 = scmp.ne.s32.totalorder %s1263_s26, 0 }
  0x97   : > { %s949_s19 = smov [#allocation10]  }
  0x98   : > { %673 = vmatmul.mubr.msk.f32.vlgmr.msra.gmra.mrb[0].mxu0 %vm326_vm1, %v321_v2  ;;  %p869_p11 = pnand %p868_p2, %p1275_p6  ;;  %s871_s9 = sshll.u32 %s949_s19, 4  ;;  %s872_s9 = int_to_ptr.vmem [resolvable:$false] %s871_s9 }
  0x99   : > { %s873_s17 = scalar_lea.vmem %s872_s9, 256  ;;  %p874_p8 = scmp.lt.s32.totalorder %s1207_s12, %s872_s9 }
  0x9a   : > { %p870_p3 = pneg %p869_p11  ;;  %p875_p12 = scmp.lt.s32.totalorder %s873_s17, %s867_s30 }
  0x9c   : > { %p876_p10 = por %p875_p12, %p874_p8 }
  0x9e   : > { %p877_p0 = pnand %p876_p10, %p870_p3 }
 0x16b   : > { %v399_v4 = vpop.f32.mrb[0].mxu0 }
 0x16c   : > { %v403_v5 = vmul.f32 0.125, %v399_v4  ;;  %v674_v6 = vpop.f32.mrb[1].mxu0 }
 0x16e   : > { %v404_v7 = vsel %vm325_vm2, -1e+09, %v403_v5 }
 0x16f   : > { %v406_v8 = vsel %vm405_vm3, %v404_v7, -inf }
 0x170   : > { %407 = vmax.xlane.f32.xlu0 %v406_v8 }
 0x1fd   : > { %v408_v9 = vpop.xlane.xlu0 %407 }
 0x1fe   : > { %v409_v10 = vsub.f32 %v404_v7, %v408_v9 }
 0x200   : > { %v410_v11 = vmul.f32 1.442695, %v409_v10 }
 0x202   : > { %743 = vpow2.f32 %v410_v11 }
 0x20c   : > { %v744_v12 = vpop.eup %743 }
 0x20d   : > { %v412_v13 = vsel %vm405_vm3, %v744_v12, 0.0 }
 0x20e   : > { %413 = vadd.xlane.f32.xlu0 %v412_v13 }
 0x29b   : > { %v414_v15 = vpop.xlane.xlu0 %413 }
 0x29c   : > { %745 = vrcp.f32 %v414_v15 }
 0x2a6   : > { %v746_v16 = vpop.eup %745 }
 0x2a7   : > { %v416_v17 = vmul.f32 %v746_v16, %v744_v12 }
 0x2a9   : > { %v417_v18 = vsel %vm325_vm2, 0.0, %v416_v17 }
 0x2aa   : > { %678 = vmatmul.mubr.msk.f32.vlgmr.msra.gmra.mrb[0].mxu1 %vm405_vm3, %v417_v18 }
 0x37d   : > { %v487_v19 = vpop.f32.mrb[0].mxu1 }
 0x37e   : > { %491 = vst.msk [vmem:[%s320_s1] sm:$0xff] %vm326_vm1, %v487_v19  ;;  %v679_v20 = vpop.f32.mrb[1].mxu1 }
 0x37f   : > { %880 = shalt.err (!%p877_p0)
}
 0x380   : > { %s881_s14 = scalar_lea.hbm %s1205_s29, 128  ;;  %s885_s7 = scalar_lea.hbm %s1253_s4, 512 }
 0x381   : > { %p882_p9 = scmp.ne.s32.totalorder %s1205_s29, %s881_s14  ;;  %p886_p13 = scmp.lt.u32.totalorder %s1205_s29, %s1253_s4 }
 0x382   : > { %p887_p4 = scmp.lt.u32.totalorder %s885_s7, %s881_s14  ;;  %p889_p2 = scmp.lt.u32.totalorder %s881_s14, %s1205_s29 }
 0x383   : > { %p883_p7 = pnand %p882_p9, %p1275_p6 }
 0x384   : > { %p888_p1 = por %p887_p4, %p886_p13 }
 0x385   : > { %p884_p5 = pneg %p883_p7 }
 0x386   : > { %p890_p11 = por %p889_p2, %p888_p1 }
 0x388   : > { %p891_p3 = pnand %p890_p11, %p884_p5 }
 0x38a   : > { %894 = shalt.err (!%p891_p3)
}
 0x38b   : > { %688 = dma.vmem_to_hbm [thread:$0]  (%p1275_p6), %s1207_s12, 128, %s1205_s29, %s493_s28  }
 0x38c PF: > { %p708_p8 = scmp.ge.s32.totalorder %s941_s18, 2  ;;  %s518_s6 = sand.u32 1, %s929_s15  }
 0x38d   : > { %p1276_p12 = scmp.ne.s32.totalorder %s1264_s27, 0  ;;  %s519_s10 = scalar_lea.sflag [#allocation4], %s518_s6 }
 0x38f   : > { %p704_p10 = pnand %p708_p8, %p1276_p12 }
 0x391   : > { %924 = dma.done.wait (!%p704_p10), %s519_s10, 128  }
 0x392   : > { %926 = vsyncadd (!%p704_p10), %s519_s10, 4294967168  ;;  %s1277_s20 = sld [smem:[#allocation15_spill]]  ;;  %s1278_s17 = sld [smem:[#allocation16_spill]] }
 0x393   : > { %p23_p0 = scmp.ge.s32.totalorder %s1000_s21, 6   ;;  %s1279_s15 = smov %s933_s16 }
 0x394   : > { %s1281_s18 = smov %s1000_s21 }
 0x395   :  { %25 = sbr.rel (!%p23_p0) target bundleno = 11 (0xb), region = 118 }
 0x398   : > { %s1280_s16 = smov %s1277_s20 }
 0x39c   :  { %524 = vsyncpa [#allocation3], 1 }
 0x39d   :  { %526 = vsyncpa [#allocation3 + $0x1], 1 }
 0x39e   :  { %527 = vsyncpa [#allocation6], 1 }
 0x39f   :  { %529 = vsyncpa [#allocation6 + $0x1], 1 }
 0x3a0   :  { %530 = vsyncpa [#allocation9], 1 }
 0x3a1   :  { %532 = vsyncpa [#allocation9 + $0x1], 1 }
 0x3a2   :  { %533 = vsyncpa [#allocation4], 1 }
 0x3a3   :  { %535 = vsyncpa [#allocation4 + $0x1], 1 }

</bundles_post_ra>
